<compile_context>
chip_gen: v5e
topology: v5e:2x2
jax: 0.10.0
libtpu: 0.0.40
codegen_flags: <defaults>
</compile_context>

<pallas_src>
import jax
import jax.numpy as jnp
from jax.experimental import pallas as pl
from jax.experimental.pallas import tpu as pltpu


def _round_up(x: int, m: int) -> int:
    return ((x + m - 1) // m) * m


def _sublane_multiple(dtype) -> int:
    # Native sublane tiling granularity per element width.
    return {4: 8, 2: 16, 1: 32}.get(jnp.dtype(dtype).itemsize, 8)


def _vmem_capacity_bytes() -> int:
    """Best-effort physical-VMEM query; conservative fallback if unavailable."""
    try:
        return int(pltpu.get_tpu_info().vmem_capacity_bytes)
    except Exception:
        pass
    try:
        kind = jax.devices()[0].device_kind.lower()
        if "v7" in kind:
            return 64 * 1024 * 1024
    except Exception:
        pass
    return 128 * 1024 * 1024


def _chomp_kernel(x_ref, o_ref):
    # x_ref: (R, W_in_block) block, o_ref: (R, W_out) block.
    # Copy the first W_out columns (if the input block was already trimmed to
    # W_out, this slice is the whole block).
    w_out = o_ref.shape[-1]
    o_ref[...] = x_ref[:, :w_out]


def chomp1d(x: jax.Array, chomp_size: int, *, force_pallas: bool = False) -> jax.Array:
    """Pallas equivalent of Chomp1d.forward: x[:, :, :, :-chomp_size]."""
    assert x.ndim == 4, "expected NCHW input"
    n, c, h, w = x.shape
    assert 0 < chomp_size < w, "chomp_size must be in (0, W)"
    w_out = w - chomp_size

    itemsize = jnp.dtype(x.dtype).itemsize
    sublane = _sublane_multiple(x.dtype)
    rows = n * c * h

    # ---- Wrapper fast path ---------------------------------------------
    # Lane-sparse W_out forces masked stores / tiny per-row output DMA
    # descriptors; for small tensors the grid + launch overhead alone exceeds
    # the copy time and XLA fuses the slice for free. Also covers rows too
    # small to form a legal (sublane, 128) block.
    out_bytes = rows * w_out * itemsize
    lane_sparse = (w_out % 128) != 0
    if not force_pallas and (rows < sublane or (lane_sparse and out_bytes < (1 << 20))):
        return x[:, :, :, :w_out]

    # Collapse (N, C, H) into one row axis: the chomp only slices the last
    # axis, so the copy is a row-wise 2-D problem. Reshape of a contiguous
    # array is metadata-only, done outside the kernel.
    x2 = x.reshape(rows, w)

    # Trim the input block's width so the chomped tail is (mostly) never
    # DMA'd from HBM. A width divisible by 128 is always a legal BlockSpec
    # dim; otherwise fall back to the full row (block dim == full array dim).
    if w_out % 128 == 0:
        w_in_block = w_out
    elif _round_up(w_out, 128) <= w:
        w_in_block = _round_up(w_out, 128)
    else:
        w_in_block = w

    # ---- Padded-footprint block sizing ----------------------------------
    # VMEM tiles pad the lane dim to 128 and the row dim to the dtype sublane
    # multiple; account for that, then size rows against a generation-aware
    # budget for the double-buffered in+out blocks.
    cap = _vmem_capacity_bytes()
    budget_total = min(48 * (1 << 20), (cap * 5) // 8)       # 40 MiB v7x, 48 MiB v5e/v6e
    vmem_limit = int(min(cap - 8 * (1 << 20), budget_total + 8 * (1 << 20)))

    w_in_pad = _round_up(w_in_block, 128)
    w_out_pad = _round_up(w_out, 128)
    per_row_padded = (w_in_pad + w_out_pad) * itemsize
    max_rows_by_vmem = max(sublane, budget_total // (2 * per_row_padded))

    if rows <= sublane:
        r = rows  # block dim equal to the full array dim is always legal
    else:
        r = min(rows, max_rows_by_vmem)
        # Keep >= 2 grid steps when the problem is big enough, so the
        # "parallel" axis shards across both TensorCores on v7x.
        if rows >= 2 * sublane:
            r = min(r, -(-rows // 2))
        r = max(sublane, (r // sublane) * sublane)

    grid = (pl.cdiv(rows, r),)

    out2 = pl.pallas_call(
        _chomp_kernel,
        out_shape=jax.ShapeDtypeStruct((rows, w_out), x.dtype),
        grid=grid,
        in_specs=[pl.BlockSpec((r, w_in_block), lambda i: (i, 0))],
        out_specs=pl.BlockSpec((r, w_out), lambda i: (i, 0)),
        compiler_params=pltpu.CompilerParams(
            dimension_semantics=("parallel",),
            vmem_limit_bytes=vmem_limit,
        ),
        cost_estimate=pl.CostEstimate(
            flops=0,
            transcendentals=0,
            bytes_accessed=rows * (w_in_block + w_out) * itemsize,
        ),
    )(x2)

    return out2.reshape(n, c, h, w_out)


if __name__ == "__main__":
    # Chomp1d has no learnable parameters; its only config is chomp_size.
    chomp_size = 3
    key = jax.random.PRNGKey(0)

    # 1) Small NCHW input consistent with STGODE's use of Chomp1d after a
    #    causally-padded temporal conv: (batch, channels, nodes, time+pad).
    #    Lane-sparse + tiny -> takes the wrapper fast path (XLA slice).
    x = jax.random.normal(key, (2, 4, 16, 16), dtype=jnp.float32)
    out_fast = jax.block_until_ready(chomp1d(x, chomp_size))
    ref = x[:, :, :, :-chomp_size]
    assert out_fast.shape == ref.shape, (out_fast.shape, ref.shape)
    assert jnp.array_equal(out_fast, ref), "fast-path mismatch vs reference slice"

    # 2) Same input, forced through the Pallas kernel (lane-sparse output
    #    block path: W_out == full output dim).
    out_pallas = jax.block_until_ready(chomp1d(x, chomp_size, force_pallas=True))
    assert out_pallas.shape == ref.shape, (out_pallas.shape, ref.shape)
    assert jnp.array_equal(out_pallas, ref), "pallas-path mismatch vs reference slice"

    # 3) Lane-aligned W_out (128) -> Pallas path by default, exercising the
    #    trimmed-input-read block (the chomped tail is never DMA'd).
    key2 = jax.random.PRNGKey(1)
    x_big = jax.random.normal(key2, (2, 4, 16, 131), dtype=jnp.float32)
    out_big = jax.block_until_ready(chomp1d(x_big, chomp_size))
    ref_big = x_big[:, :, :, :-chomp_size]
    assert out_big.shape == ref_big.shape, (out_big.shape, ref_big.shape)
    assert jnp.array_equal(out_big, ref_big), "aligned-path mismatch vs reference slice"

    print("KERNEL_OK")
</pallas_src>

<mosaic_0001>
module attributes {stable_mosaic.version = 11 : i64} {
  func.func @_chomp_kernel(%arg0: i32, %arg1: memref<64x16xf32, #tpu.memory_space<vmem>>, %arg2: memref<64x13xf32, #tpu.memory_space<vmem>>) attributes {dimension_semantics = [#tpu.dimension_semantics<parallel>], iteration_bounds = array<i64: 2>, scalar_prefetch = 0 : i64, scratch_operands = 0 : i64, tpu.core_type = #tpu.core_type<tc>, window_params = [{transform_indices = @transform_0, window_bounds = array<i64: 64, 16>}, {transform_indices = @transform_1, window_bounds = array<i64: 64, 13>}]} {
    %c0 = arith.constant 0 : index
    %c0_0 = arith.constant 0 : index
    %0 = vector.load %arg1[%c0, %c0_0] : memref<64x16xf32, #tpu.memory_space<vmem>>, vector<64x13xf32>
    %c0_1 = arith.constant 0 : index
    %c0_2 = arith.constant 0 : index
    %1 = vector.load %arg2[%c0_1, %c0_2] : memref<64x13xf32, #tpu.memory_space<vmem>>, vector<64x13xf32>
    tpu.vector_store %arg2[%c0_1, %c0_2], %0 {strides = array<i32>} : memref<64x13xf32, #tpu.memory_space<vmem>>, vector<64x13xf32>,
    return
  }
  func.func @transform_0(%arg0: i32) -> (i32, i32) {
    %c0_i32 = arith.constant 0 : i32
    %c0_i32_0 = arith.constant 0 : i32
    return %arg0, %c0_i32 : i32, i32
  }
  func.func @transform_1(%arg0: i32) -> (i32, i32) {
    %c0_i32 = arith.constant 0 : i32
    %c0_i32_0 = arith.constant 0 : i32
    return %arg0, %c0_i32 : i32, i32
  }
}

</mosaic_0001>

<bundles_post_ra>
// kernel: tpu_custom_call.1
= control target key start
LH: loop header
LB: loop body
LE: loop exit
PB: predicated region body
PF: predicated region fallthrough
CT: control target
= control target key end

     0   :  { %s230_s6 = smov 0   ;;  %s255_s0 = inlined_call_operand.vmem [shape: f32[128,16], index: 0, kind: input, shape index: {}]   ;;  %s256_s1 = inlined_call_operand.vmem [shape: f32[128,13], index: 1, kind: output, shape index: {}]  }
   0x1 LB: > { %s193_s7 = sadd.s32 4294967295, %s218_s6   ;;  %p197_p0 = scmp.ge.s32.totalorder %s218_s6, 1  ;;  %s218_s6 = sphi %s230_s6, %s11_s6  }
   0x2   : > { %p88_p1 = scmp.lt.s32.totalorder %s218_s6, 3 }
   0x4   : > { %p89_p2 = pnand %p197_p0, %p88_p1 }
   0x5   : > { %s198_s8 = sshll.u32 (!%p89_p2), %s193_s7, 3 }
   0x6   : > { %92 = sbr.rel (%p89_p2) target bundleno = 23 (0x17), region = 24  ;;  %p109_p3 = scmp.lt.s32.totalorder (!%p89_p2), %s198_s8, 15 }
   0xb   : > { %s258_s8 = smov (!%p109_p3, %s198_s8), 15  ;;  %vm128_vm0 = vcmask 105472  }
   0xc   : > { %s199_s9 = sshll.u32 %s258_s8, 3 }
   0xd   : > { %s112_s12 = scalar_lea.vmem %s255_s0, %s199_s9  ;;  %s118_s15 = scalar_lea.vmem %s256_s1, %s199_s9 }
   0xe   : > { %v120_v0 = vld [vmem:[%s112_s12] sm:$0xff]  ;;  %v121_v1 = vld [vmem:[%s112_s12 + $0x8] sm:$0xff]  ;;  %v122_v2 = vld [vmem:[%s112_s12 + $0x10] sm:$0xff] }
   0xf   : > { %129 = vst.msk [vmem:[%s118_s15] sm:$0xff] %vm128_vm0, %v120_v0  ;;  %v123_v3 = vld [vmem:[%s112_s12 + $0x18] sm:$0xff]  ;;  %v124_v4 = vld [vmem:[%s112_s12 + $0x20] sm:$0xff]  ;;  %v125_v5 = vld [vmem:[%s112_s12 + $0x28] sm:$0xff] }
  0x10   : > { %130 = vst.msk [vmem:[%s118_s15 + $0x8] sm:$0xff] %vm128_vm0, %v121_v1  ;;  %v126_v6 = vld [vmem:[%s112_s12 + $0x30] sm:$0xff]  ;;  %v127_v7 = vld [vmem:[%s112_s12 + $0x38] sm:$0xff] }
  0x11   : > { %131 = vst.msk [vmem:[%s118_s15 + $0x10] sm:$0xff] %vm128_vm0, %v122_v2 }
  0x12   : > { %132 = vst.msk [vmem:[%s118_s15 + $0x18] sm:$0xff] %vm128_vm0, %v123_v3 }
  0x13   : > { %133 = vst.msk [vmem:[%s118_s15 + $0x20] sm:$0xff] %vm128_vm0, %v124_v4 }
  0x14   : > { %134 = vst.msk [vmem:[%s118_s15 + $0x28] sm:$0xff] %vm128_vm0, %v125_v5 }
  0x15   : > { %135 = vst.msk [vmem:[%s118_s15 + $0x30] sm:$0xff] %vm128_vm0, %v126_v6 }
  0x16   : > { %136 = vst.msk [vmem:[%s118_s15 + $0x38] sm:$0xff] %vm128_vm0, %v127_v7 }
  0x17 PF: > { %s11_s6 = sadd.s32 1, %s218_s6  }
  0x18   : > { %p8_p4 = scmp.ge.s32.totalorder %s11_s6, 4  }
  0x1a   :  { %10 = sbr.rel (!%p8_p4) target bundleno = 1 (0x1), region = 54 }

</bundles_post_ra>
